<compile_context>
chip_gen: v6e
topology: v6e:2x2x1
jax: 0.10.0
libtpu: 0.0.40
codegen_flags: <defaults>
</compile_context>

<pallas_src>
import functools
import math

import jax
import jax.numpy as jnp
from jax.experimental import pallas as pl
from jax.experimental.pallas import tpu as pltpu


# --------------------------- device-aware budgets --------------------------- #

def _vmem_capacity_bytes():
    try:
        return int(pltpu.get_tpu_info().vmem_capacity_bytes)
    except Exception:
        return 64 * 1024 * 1024          # conservative (v7x-sized) fallback


def _num_tensorcores():
    try:
        kind = jax.devices()[0].device_kind.lower()
        if "v7" in kind or "7x" in kind:
            return 2                     # v7x: 2 TensorCores per chip
    except Exception:
        pass
    return 1                             # v5e / v6e: 1 TC per chip


_VMEM_CAP = _vmem_capacity_bytes()
_VMEM_LIMIT_BYTES = min(_VMEM_CAP * 3 // 4, 100 * 1024 * 1024)   # 96 MiB / 48 MiB
_FUSED_VMEM_BUDGET = _VMEM_CAP // 2                              # 64 MiB / 32 MiB
_NUM_TC = _num_tensorcores()
_M_TILE_CAP = 1024


# ------------------------------ small helpers ------------------------------- #

def _round_up(x, m):
    return ((x + m - 1) // m) * m


def _pick_tile(padded, align, max_tile):
    """Largest tile <= max_tile that divides `padded` (never re-pads beyond the
    first round_up).  Prefers MXU-friendly 256-multiples (v6e/v7x 256x256 MXU)."""
    if padded <= max_tile:
        return padded
    steps = (256, align) if align < 256 else (align,)
    for step in steps:
        for cand in range(max_tile - max_tile % step, step - 1, -step):
            if cand >= align and padded % cand == 0:
                return cand
    return align                          # align always divides padded


def _maybe_split_m(tm, Mp):
    """Guarantee >= _NUM_TC grid steps along the parallel M axis (v7x megacore)."""
    if _NUM_TC < 2 or Mp // tm >= _NUM_TC or Mp < 8 * _NUM_TC:
        return tm
    cand = ((Mp // _NUM_TC) // 8) * 8
    while cand >= 8:
        if Mp % cand == 0:
            return cand
        cand -= 8
    return tm


def _apply_act(x, name):
    # PyTorch-style activation names (subset used by NonLinearMLP configs).
    if name is None or name == "Identity":
        return x
    if name == "ReLU":
        return jnp.maximum(x, 0.0)
    if name == "Tanh":
        return jnp.tanh(x)
    if name == "GELU":
        # tanh approximation -> EUP path (cheaper than erf polynomial on VPU).
        return jax.nn.gelu(x, approximate=True)
    if name == "Sigmoid":
        return jax.nn.sigmoid(x)
    if name == "SiLU":
        return x * jax.nn.sigmoid(x)
    if name == "LeakyReLU":
        return jnp.where(x >= 0.0, x, 0.01 * x)
    if name == "ELU":
        return jnp.where(x >= 0.0, x, jnp.expm1(x))
    # TODO(synk): other nn.__dict__ activations are not mapped here.
    raise ValueError(f"unsupported activation {name}")


def _resident_spec(shape, use_buffered):
    """Constant-index (resident) block; single-buffered when supported."""
    if use_buffered:
        return pl.BlockSpec(shape, lambda *_: (0, 0), pipeline_mode=pl.Buffered(1))
    return pl.BlockSpec(shape, lambda *_: (0, 0))


def _with_buffered_fallback(call):
    """Try single-buffered resident blocks; retry with default buffering if the
    installed jax rejects pipeline_mode=pl.Buffered(1)."""
    try:
        return call(True)
    except Exception:
        return call(False)


# ------------------------- tiled linear (fallback) -------------------------- #

def _linear_kernel(x_ref, w_ref, b_ref, o_ref, acc_ref, *, activation):
    k = pl.program_id(2)

    @pl.when(k == 0)
    def _():
        # Initialize the accumulator with the broadcast bias (saves the epilogue add).
        acc_ref[...] = jnp.broadcast_to(b_ref[...], acc_ref.shape)

    acc_ref[...] += jnp.dot(x_ref[...], w_ref[...],
                            preferred_element_type=jnp.float32)

    @pl.when(k == pl.num_programs(2) - 1)
    def _():
        o_ref[...] = _apply_act(acc_ref[...], activation).astype(o_ref.dtype)


def _linear_padded(xp, wp, bp, activation, out_dtype):
    """y = act(xp @ wp + bp) on already-padded operands.
    xp: (Mp, Kp) bf16, wp: (Kp, Np) bf16, bp: (1, Np) f32 -> (Mp, Np) out_dtype."""
    Mp, Kp = xp.shape
    Np = wp.shape[1]
    tm = _maybe_split_m(_pick_tile(Mp, 8, _M_TILE_CAP), Mp)
    tk = _pick_tile(Kp, 128, 512)
    tn = _pick_tile(Np, 128, 512)
    grid = (Mp // tm, Np // tn, Kp // tk)
    return pl.pallas_call(
        functools.partial(_linear_kernel, activation=activation),
        out_shape=jax.ShapeDtypeStruct((Mp, Np), out_dtype),
        grid_spec=pltpu.PrefetchScalarGridSpec(
            num_scalar_prefetch=0,
            grid=grid,
            in_specs=[
                pl.BlockSpec((tm, tk), lambda i, j, k: (i, k)),
                pl.BlockSpec((tk, tn), lambda i, j, k: (k, j)),
                pl.BlockSpec((1, tn), lambda i, j, k: (0, j)),
            ],
            out_specs=pl.BlockSpec((tm, tn), lambda i, j, k: (i, j)),
            scratch_shapes=[pltpu.VMEM((tm, tn), jnp.float32)],
        ),
        compiler_params=pltpu.CompilerParams(
            dimension_semantics=("parallel", "parallel", "arbitrary"),
            vmem_limit_bytes=_VMEM_LIMIT_BYTES,
        ),
    )(xp, wp, bp)


def linear(x, w, b, activation=None):
    """Standalone y = act(x @ w + b); pads/casts per call (testing convenience)."""
    M, K = x.shape
    N = w.shape[1]
    Mp, Kp, Np = _round_up(M, 8), _round_up(K, 128), _round_up(N, 128)
    xp = jnp.pad(x.astype(jnp.bfloat16), ((0, Mp - M), (0, Kp - K)))
    wp = jnp.pad(w.astype(jnp.bfloat16), ((0, Kp - K), (0, Np - N)))
    bp = jnp.pad(b.astype(jnp.float32), (0, Np - N)).reshape(1, Np)
    return _linear_padded(xp, wp, bp, activation, jnp.float32)[:M, :N]


# ------------------------ fused MLP (single kernel) ------------------------- #

def _mlp_resident_kernel(x_ref, w1_ref, b1_ref, w2_ref, b2_ref, o_ref, *, activation):
    # All weights resident in VMEM; one grid axis over M only.
    h = jnp.dot(x_ref[...], w1_ref[...], preferred_element_type=jnp.float32)
    h = _apply_act(h + b1_ref[...], activation).astype(jnp.bfloat16)
    y = jnp.dot(h, w2_ref[...], preferred_element_type=jnp.float32) + b2_ref[...]
    o_ref[...] = y.astype(o_ref.dtype)


def _mlp_resident_call(xp, w1p, b1p, w2p, b2p, tm, activation, use_buffered):
    Mp, Kp = xp.shape
    Hp = w1p.shape[1]
    Np = w2p.shape[1]
    return pl.pallas_call(
        functools.partial(_mlp_resident_kernel, activation=activation),
        out_shape=jax.ShapeDtypeStruct((Mp, Np), jnp.float32),
        grid_spec=pltpu.PrefetchScalarGridSpec(
            num_scalar_prefetch=0,
            grid=(Mp // tm,),
            in_specs=[
                pl.BlockSpec((tm, Kp), lambda i: (i, 0)),        # x tile (streamed)
                _resident_spec((Kp, Hp), use_buffered),          # W_in  (resident)
                _resident_spec((1, Hp), use_buffered),           # b_in  (resident)
                _resident_spec((Hp, Np), use_buffered),          # W_out (resident)
                _resident_spec((1, Np), use_buffered),           # b_out (resident)
            ],
            out_specs=pl.BlockSpec((tm, Np), lambda i: (i, 0)),
        ),
        compiler_params=pltpu.CompilerParams(
            dimension_semantics=("parallel",),
            vmem_limit_bytes=_VMEM_LIMIT_BYTES,
        ),
    )(xp, w1p, b1p, w2p, b2p)


def _mlp_ktiled_kernel(x_ref, w1_ref, b1_ref, w2_ref, b2_ref, o_ref, h_acc,
                       *, activation):
    k = pl.program_id(1)

    @pl.when(k == 0)
    def _():
        h_acc[...] = jnp.broadcast_to(b1_ref[...], h_acc.shape)

    # Accumulate the first matmul over the input-dim (K) grid axis.
    h_acc[...] += jnp.dot(x_ref[...], w1_ref[...],
                          preferred_element_type=jnp.float32)

    @pl.when(k == pl.num_programs(1) - 1)
    def _():
        h = _apply_act(h_acc[...], activation).astype(jnp.bfloat16)
        y = jnp.dot(h, w2_ref[...], preferred_element_type=jnp.float32) + b2_ref[...]
        o_ref[...] = y.astype(o_ref.dtype)


def _mlp_ktiled_call(xp, w1p, b1p, w2p, b2p, tm, tk, activation, use_buffered):
    Mp, Kp = xp.shape
    Hp = w1p.shape[1]
    Np = w2p.shape[1]
    return pl.pallas_call(
        functools.partial(_mlp_ktiled_kernel, activation=activation),
        out_shape=jax.ShapeDtypeStruct((Mp, Np), jnp.float32),
        grid_spec=pltpu.PrefetchScalarGridSpec(
            num_scalar_prefetch=0,
            grid=(Mp // tm, Kp // tk),
            in_specs=[
                pl.BlockSpec((tm, tk), lambda i, k: (i, k)),     # x tile
                pl.BlockSpec((tk, Hp), lambda i, k: (k, 0)),     # W_in K-slab
                _resident_spec((1, Hp), use_buffered),           # b_in  (resident)
                _resident_spec((Hp, Np), use_buffered),          # W_out (resident)
                _resident_spec((1, Np), use_buffered),           # b_out (resident)
            ],
            out_specs=pl.BlockSpec((tm, Np), lambda i, k: (i, 0)),
            scratch_shapes=[pltpu.VMEM((tm, Hp), jnp.float32)],
        ),
        compiler_params=pltpu.CompilerParams(
            dimension_semantics=("parallel", "arbitrary"),
            vmem_limit_bytes=_VMEM_LIMIT_BYTES,
        ),
    )(xp, w1p, b1p, w2p, b2p)


# --------------------------- public MLP interface --------------------------- #

def prepare_nonlinear_mlp_params(w1, b1, w2, b2):
    """Pad feature dims to multiples of 128 and cast weights to bf16 ONCE.
    Padded W rows/cols stay exactly zero (required for activation(0) != 0 cases)."""
    K, H = w1.shape
    N = w2.shape[1]
    Kp, Hp, Np = _round_up(K, 128), _round_up(H, 128), _round_up(N, 128)
    w1p = jnp.pad(w1.astype(jnp.bfloat16), ((0, Kp - K), (0, Hp - H)))
    b1p = jnp.pad(b1.astype(jnp.float32), (0, Hp - H)).reshape(1, Hp)
    w2p = jnp.pad(w2.astype(jnp.bfloat16), ((0, Hp - H), (0, Np - N)))
    b2p = jnp.pad(b2.astype(jnp.float32), (0, Np - N)).reshape(1, Np)
    return {"w1": w1p, "b1": b1p, "w2": w2p, "b2": b2p, "dims": (K, H, N)}


def nonlinear_mlp_apply(x, params, activation="ReLU"):
    """NonLinearMLP forward: linear_out(act(linear_in(x))) with pre-padded params."""
    K, H, N = params["dims"]
    w1p, b1p, w2p, b2p = params["w1"], params["b1"], params["w2"], params["b2"]
    Kp, Hp = w1p.shape
    Np = w2p.shape[1]

    lead = x.shape[:-1]
    M = int(math.prod(lead)) if lead else 1
    x2d = x.reshape(M, K)

    Mp = _round_up(M, 8)
    tm = _maybe_split_m(_pick_tile(Mp, 8, _M_TILE_CAP), Mp)
    xp = jnp.pad(x2d.astype(jnp.bfloat16), ((0, Mp - M), (0, Kp - K)))

    # VMEM working-set estimates: bf16 streams, f32 accum/out, resident = 1 buffer.
    common = (2 * Hp * Np            # W_out resident (bf16)
              + 4 * (Hp + Np)        # biases (f32)
              + 2 * 4 * tm * Np      # output tile (f32, double-buffered)
              + 4 * tm * Hp)         # hidden intermediate / accumulator (f32)
    bytes_resident = common + 2 * 2 * tm * Kp + 2 * Kp * Hp
    tk = _pick_tile(Kp, 128, 512)
    bytes_ktiled = common + 2 * 2 * tm * tk + 2 * 2 * tk * Hp

    if bytes_resident <= _FUSED_VMEM_BUDGET:
        out = _with_buffered_fallback(
            lambda ub: _mlp_resident_call(xp, w1p, b1p, w2p, b2p, tm, activation, ub))
    elif bytes_ktiled <= _FUSED_VMEM_BUDGET:
        out = _with_buffered_fallback(
            lambda ub: _mlp_ktiled_call(xp, w1p, b1p, w2p, b2p, tm, tk, activation, ub))
    else:
        # TODO(synk): an N-tiled fused epilogue (stream W_out in (Hp, tn) slabs with
        # h_acc resident) would keep the hidden out of HBM even for huge W_out.
        # Un-fused fallback: hidden stays padded bf16 and feeds the 2nd linear directly.
        h = _linear_padded(xp, w1p, b1p, activation, jnp.bfloat16)
        out = _linear_padded(h, w2p, b2p, None, jnp.float32)

    return out[:M, :N].reshape(*lead, N)


def nonlinear_mlp(x, w1, b1, w2, b2, activation="ReLU"):
    """Convenience wrapper: prepare params per call (prefer preparing once)."""
    return nonlinear_mlp_apply(x, prepare_nonlinear_mlp_params(w1, b1, w2, b2),
                               activation=activation)


# --------------------------------- main ------------------------------------ #

if __name__ == "__main__":
    B, S = 2, 8
    INPUT_DIM = 32
    OUTPUT_DIM = 128
    HIDDEN_DIM = INPUT_DIM          # NonLinearMLP: hidden_dim=None -> input_dim

    key = jax.random.PRNGKey(0)
    kx, kw1, kb1, kw2, kb2 = jax.random.split(key, 5)

    x = jax.random.normal(kx, (B, S, INPUT_DIM), jnp.float32)
    w_in = 0.02 * jax.random.normal(kw1, (INPUT_DIM, HIDDEN_DIM), jnp.float32)
    b_in = 0.02 * jax.random.normal(kb1, (HIDDEN_DIM,), jnp.float32)
    w_out = 0.02 * jax.random.normal(kw2, (HIDDEN_DIM, OUTPUT_DIM), jnp.float32)
    b_out = 0.02 * jax.random.normal(kb2, (OUTPUT_DIM,), jnp.float32)

    # Prepare (pad + bf16-cast) the weights ONCE, then run the fused Pallas MLP.
    params = prepare_nonlinear_mlp_params(w_in, b_in, w_out, b_out)
    out = nonlinear_mlp_apply(x, params, activation="ReLU")
    out = jax.block_until_ready(out)
    assert out.shape == (B, S, OUTPUT_DIM), out.shape

    # Reference (plain JAX, f32) for semantic check (bf16 MXU => loose tolerance).
    x2d = x.reshape(-1, INPUT_DIM)
    ref = jnp.maximum(x2d @ w_in + b_in, 0.0) @ w_out + b_out
    ref = ref.reshape(B, S, OUTPUT_DIM)
    assert jnp.allclose(out, ref, rtol=5e-2, atol=5e-3)

    # Also exercise the general tiled-linear kernel (fallback building block).
    y_lin = jax.block_until_ready(linear(x2d, w_in, b_in, activation="ReLU"))
    ref_lin = jnp.maximum(x2d @ w_in + b_in, 0.0)
    assert y_lin.shape == ref_lin.shape
    assert jnp.allclose(y_lin, ref_lin, rtol=5e-2, atol=5e-3)

    assert bool(jnp.all(jnp.isfinite(out)))
    print("KERNEL_OK")
</pallas_src>

<mosaic_0001>
module attributes {stable_mosaic.version = 11 : i64} {
  func.func @_mlp_resident_kernel(%arg0: i32, %arg1: memref<16x128xbf16, #tpu.memory_space<vmem>>, %arg2: memref<128x128xbf16, #tpu.memory_space<vmem>>, %arg3: memref<1x128xf32, #tpu.memory_space<vmem>>, %arg4: memref<128x128xbf16, #tpu.memory_space<vmem>>, %arg5: memref<1x128xf32, #tpu.memory_space<vmem>>, %arg6: memref<16x128xf32, #tpu.memory_space<vmem>>) attributes {dimension_semantics = [#tpu.dimension_semantics<parallel>], iteration_bounds = array<i64: 1>, scalar_prefetch = 0 : i64, scratch_operands = 0 : i64, tpu.core_type = #tpu.core_type<tc>, window_params = [{transform_indices = @transform_0, window_bounds = array<i64: 16, 128>}, {pipeline_mode = #tpu.pipeline_mode<synchronous>, transform_indices = @transform_1, window_bounds = array<i64: 128, 128>}, {pipeline_mode = #tpu.pipeline_mode<synchronous>, transform_indices = @transform_2, window_bounds = array<i64: 1, 128>}, {pipeline_mode = #tpu.pipeline_mode<synchronous>, transform_indices = @transform_3, window_bounds = array<i64: 128, 128>}, {pipeline_mode = #tpu.pipeline_mode<synchronous>, transform_indices = @transform_4, window_bounds = array<i64: 1, 128>}, {transform_indices = @transform_5, window_bounds = array<i64: 16, 128>}]} {
    %c0 = arith.constant 0 : index
    %c0_0 = arith.constant 0 : index
    %0 = vector.load %arg1[%c0, %c0_0] : memref<16x128xbf16, #tpu.memory_space<vmem>>, vector<16x128xbf16>
    %c0_1 = arith.constant 0 : index
    %c0_2 = arith.constant 0 : index
    %1 = vector.load %arg2[%c0_1, %c0_2] : memref<128x128xbf16, #tpu.memory_space<vmem>>, vector<128x128xbf16>
    %cst = arith.constant dense<0.000000e+00> : vector<16x128xf32>
    %2 = tpu.matmul %0, %1, %cst {dimension_numbers = #tpu.dot_dimension_numbers<[1], [0], [0], [1], [0, 0, 1, 1], [], []>} : vector<16x128xbf16>, vector<128x128xbf16>, vector<16x128xf32> -> vector<16x128xf32>
    %c0_3 = arith.constant 0 : index
    %c0_4 = arith.constant 0 : index
    %3 = vector.load %arg3[%c0_3, %c0_4] : memref<1x128xf32, #tpu.memory_space<vmem>>, vector<1x128xf32>
    %4 = vector.broadcast %3 : vector<1x128xf32> to vector<16x128xf32>
    %5 = arith.addf %2, %4 : vector<16x128xf32>
    %cst_5 = arith.constant 0.000000e+00 : f32
    %6 = vector.broadcast %cst_5 : f32 to vector<16x128xf32>
    %7 = arith.maximumf %5, %6 : vector<16x128xf32>
    %8 = arith.truncf %7 : vector<16x128xf32> to vector<16x128xbf16>
    %c0_6 = arith.constant 0 : index
    %c0_7 = arith.constant 0 : index
    %9 = vector.load %arg4[%c0_6, %c0_7] : memref<128x128xbf16, #tpu.memory_space<vmem>>, vector<128x128xbf16>
    %cst_8 = arith.constant dense<0.000000e+00> : vector<16x128xf32>
    %10 = tpu.matmul %8, %9, %cst_8 {dimension_numbers = #tpu.dot_dimension_numbers<[1], [0], [0], [1], [0, 0, 1, 1], [], []>} : vector<16x128xbf16>, vector<128x128xbf16>, vector<16x128xf32> -> vector<16x128xf32>
    %c0_9 = arith.constant 0 : index
    %c0_10 = arith.constant 0 : index
    %11 = vector.load %arg5[%c0_9, %c0_10] : memref<1x128xf32, #tpu.memory_space<vmem>>, vector<1x128xf32>
    %12 = vector.broadcast %11 : vector<1x128xf32> to vector<16x128xf32>
    %13 = arith.addf %10, %12 : vector<16x128xf32>
    %c0_11 = arith.constant 0 : index
    %c0_12 = arith.constant 0 : index
    %14 = vector.load %arg6[%c0_11, %c0_12] : memref<16x128xf32, #tpu.memory_space<vmem>>, vector<16x128xf32>
    tpu.vector_store %arg6[%c0_11, %c0_12], %13 {strides = array<i32>} : memref<16x128xf32, #tpu.memory_space<vmem>>, vector<16x128xf32>,
    return
  }
  func.func @transform_0(%arg0: i32) -> (i32, i32) {
    %c0_i32 = arith.constant 0 : i32
    %c0_i32_0 = arith.constant 0 : i32
    return %arg0, %c0_i32 : i32, i32
  }
  func.func @transform_1(%arg0: i32) -> (i32, i32) {
    %c0_i32 = arith.constant 0 : i32
    %c0_i32_0 = arith.constant 0 : i32
    %c0_i32_1 = arith.constant 0 : i32
    return %c0_i32, %c0_i32_0 : i32, i32
  }
  func.func @transform_2(%arg0: i32) -> (i32, i32) {
    %c0_i32 = arith.constant 0 : i32
    %c0_i32_0 = arith.constant 0 : i32
    %c0_i32_1 = arith.constant 0 : i32
    return %c0_i32, %c0_i32_0 : i32, i32
  }
  func.func @transform_3(%arg0: i32) -> (i32, i32) {
    %c0_i32 = arith.constant 0 : i32
    %c0_i32_0 = arith.constant 0 : i32
    %c0_i32_1 = arith.constant 0 : i32
    return %c0_i32, %c0_i32_0 : i32, i32
  }
  func.func @transform_4(%arg0: i32) -> (i32, i32) {
    %c0_i32 = arith.constant 0 : i32
    %c0_i32_0 = arith.constant 0 : i32
    %c0_i32_1 = arith.constant 0 : i32
    return %c0_i32, %c0_i32_0 : i32, i32
  }
  func.func @transform_5(%arg0: i32) -> (i32, i32) {
    %c0_i32 = arith.constant 0 : i32
    %c0_i32_0 = arith.constant 0 : i32
    return %arg0, %c0_i32 : i32, i32
  }
}

module attributes {stable_mosaic.version = 11 : i64} {
  func.func @_mlp_resident_kernel(%arg0: i32, %arg1: memref<16x128xbf16, #tpu.memory_space<vmem>>, %arg2: memref<128x128xbf16, #tpu.memory_space<vmem>>, %arg3: memref<1x128xf32, #tpu.memory_space<vmem>>, %arg4: memref<128x128xbf16, #tpu.memory_space<vmem>>, %arg5: memref<1x128xf32, #tpu.memory_space<vmem>>, %arg6: memref<16x128xf32, #tpu.memory_space<vmem>>) attributes {dimension_semantics = [#tpu.dimension_semantics<parallel>], iteration_bounds = array<i64: 1>, scalar_prefetch = 0 : i64, scratch_operands = 0 : i64, tpu.core_type = #tpu.core_type<tc>, window_params = [{transform_indices = @transform_0, window_bounds = array<i64: 16, 128>}, {pipeline_mode = #tpu.pipeline_mode<synchronous>, transform_indices = @transform_1, window_bounds = array<i64: 128, 128>}, {pipeline_mode = #tpu.pipeline_mode<synchronous>, transform_indices = @transform_2, window_bounds = array<i64: 1, 128>}, {pipeline_mode = #tpu.pipeline_mode<synchronous>, transform_indices = @transform_3, window_bounds = array<i64: 128, 128>}, {pipeline_mode = #tpu.pipeline_mode<synchronous>, transform_indices = @transform_4, window_bounds = array<i64: 1, 128>}, {transform_indices = @transform_5, window_bounds = array<i64: 16, 128>}]} {
    %c0 = arith.constant 0 : index
    %c0_0 = arith.constant 0 : index
    %0 = vector.load %arg1[%c0, %c0_0] : memref<16x128xbf16, #tpu.memory_space<vmem>>, vector<16x128xbf16>
    %c0_1 = arith.constant 0 : index
    %c0_2 = arith.constant 0 : index
    %1 = vector.load %arg2[%c0_1, %c0_2] : memref<128x128xbf16, #tpu.memory_space<vmem>>, vector<128x128xbf16>
    %cst = arith.constant dense<0.000000e+00> : vector<16x128xf32>
    %2 = tpu.matmul %0, %1, %cst {dimension_numbers = #tpu.dot_dimension_numbers<[1], [0], [0], [1], [0, 0, 1, 1], [], []>} : vector<16x128xbf16>, vector<128x128xbf16>, vector<16x128xf32> -> vector<16x128xf32>
    %c0_3 = arith.constant 0 : index
    %c0_4 = arith.constant 0 : index
    %3 = vector.load %arg3[%c0_3, %c0_4] : memref<1x128xf32, #tpu.memory_space<vmem>>, vector<1x128xf32>
    %4 = vector.broadcast %3 : vector<1x128xf32> to vector<16x128xf32>
    %5 = arith.addf %2, %4 : vector<16x128xf32>
    %cst_5 = arith.constant 0.000000e+00 : f32
    %6 = vector.broadcast %cst_5 : f32 to vector<16x128xf32>
    %7 = arith.maximumf %5, %6 : vector<16x128xf32>
    %8 = arith.truncf %7 : vector<16x128xf32> to vector<16x128xbf16>
    %c0_6 = arith.constant 0 : index
    %c0_7 = arith.constant 0 : index
    %9 = vector.load %arg4[%c0_6, %c0_7] : memref<128x128xbf16, #tpu.memory_space<vmem>>, vector<128x128xbf16>
    %cst_8 = arith.constant dense<0.000000e+00> : vector<16x128xf32>
    %10 = tpu.matmul %8, %9, %cst_8 {dimension_numbers = #tpu.dot_dimension_numbers<[1], [0], [0], [1], [0, 0, 1, 1], [], []>} : vector<16x128xbf16>, vector<128x128xbf16>, vector<16x128xf32> -> vector<16x128xf32>
    %c0_9 = arith.constant 0 : index
    %c0_10 = arith.constant 0 : index
    %11 = vector.load %arg5[%c0_9, %c0_10] : memref<1x128xf32, #tpu.memory_space<vmem>>, vector<1x128xf32>
    %12 = vector.broadcast %11 : vector<1x128xf32> to vector<16x128xf32>
    %13 = arith.addf %10, %12 : vector<16x128xf32>
    %c0_11 = arith.constant 0 : index
    %c0_12 = arith.constant 0 : index
    %14 = vector.load %arg6[%c0_11, %c0_12] : memref<16x128xf32, #tpu.memory_space<vmem>>, vector<16x128xf32>
    tpu.vector_store %arg6[%c0_11, %c0_12], %13 {strides = array<i32>} : memref<16x128xf32, #tpu.memory_space<vmem>>, vector<16x128xf32>,
    return
  }
  func.func @transform_0(%arg0: i32) -> (i32, i32) {
    %c0_i32 = arith.constant 0 : i32
    %c0_i32_0 = arith.constant 0 : i32
    return %arg0, %c0_i32 : i32, i32
  }
  func.func @transform_1(%arg0: i32) -> (i32, i32) {
    %c0_i32 = arith.constant 0 : i32
    %c0_i32_0 = arith.constant 0 : i32
    %c0_i32_1 = arith.constant 0 : i32
    return %c0_i32, %c0_i32_0 : i32, i32
  }
  func.func @transform_2(%arg0: i32) -> (i32, i32) {
    %c0_i32 = arith.constant 0 : i32
    %c0_i32_0 = arith.constant 0 : i32
    %c0_i32_1 = arith.constant 0 : i32
    return %c0_i32, %c0_i32_0 : i32, i32
  }
  func.func @transform_3(%arg0: i32) -> (i32, i32) {
    %c0_i32 = arith.constant 0 : i32
    %c0_i32_0 = arith.constant 0 : i32
    %c0_i32_1 = arith.constant 0 : i32
    return %c0_i32, %c0_i32_0 : i32, i32
  }
  func.func @transform_4(%arg0: i32) -> (i32, i32) {
    %c0_i32 = arith.constant 0 : i32
    %c0_i32_0 = arith.constant 0 : i32
    %c0_i32_1 = arith.constant 0 : i32
    return %c0_i32, %c0_i32_0 : i32, i32
  }
  func.func @transform_5(%arg0: i32) -> (i32, i32) {
    %c0_i32 = arith.constant 0 : i32
    %c0_i32_0 = arith.constant 0 : i32
    return %arg0, %c0_i32 : i32, i32
  }
}

</mosaic_0001>

<bundles_post_ra>
// kernel: tpu_custom_call.1
= control target key start
LH: loop header
LB: loop body
LE: loop exit
PB: predicated region body
PF: predicated region fallthrough
CT: control target
= control target key end

     0   :  { %10 = vsyncpa [#allocation3], 0  ;;  %s566_s0 = inlined_call_operand.hbm [shape: bf16[16,128], index: 0, kind: input, shape index: {}]   ;;  %s567_s1 = inlined_call_operand.hbm [shape: bf16[128,128], index: 1, kind: input, shape index: {}]   ;;  %s568_s2 = inlined_call_operand.vmem [shape: f32[1,128], index: 2, kind: input, shape index: {}]   ;;  %s569_s3 = inlined_call_operand.hbm [shape: bf16[128,128], index: 3, kind: input, shape index: {}]   ;;  %s570_s4 = inlined_call_operand.vmem [shape: f32[1,128], index: 4, kind: input, shape index: {}]   ;;  %s571_s5 = inlined_call_operand.hbm [shape: f32[16,128], index: 5, kind: output, shape index: {}]  }
   0x1   :  { %11 = vsyncpa [#allocation6], 0 }
   0x2   :  { %12 = vsyncpa [#allocation4], 0  ;;  %s508_s18 = smov [#allocation5]   ;;  %s509_s20 = smov [#allocation2]  }
   0x3   :  { %s30_s19 = sshll.u32 %s508_s18, 4  ;;  %s18_s21 = sshll.u32 %s509_s20, 4  ;;  %s31_s19 = int_to_ptr.vmem [resolvable:$true] %s30_s19  ;;  %s19_s21 = int_to_ptr.vmem [resolvable:$true] %s18_s21 }
   0x4   :  { %s430_s22 = scalar_lea.vmem %s31_s19, 1024  ;;  %p435_p1 = scmp.lt.s32.totalorder %s31_s19, %s31_s19 }
   0x5   :  { %p431_p0 = scmp.ne.s32.totalorder %s31_s19, %s430_s22  ;;  %p436_p2 = scmp.lt.s32.totalorder %s430_s22, %s430_s22 }
   0x7   :  { %p437_p3 = por %p436_p2, %p435_p1 }
   0x9   :  { %p438_p4 = pnand %p437_p3, %p431_p0 }
   0xb   :  { %441 = shalt.err (!%p438_p4)
}
   0xc   :  { %s510_s23 = smov 64   ;;  %s511_s24 = smov 4  }
   0xd   :  { %36 = dma.hbm_to_vmem [thread:$0]  %s567_s1, 1024, %s31_s19, [#allocation6], %s510_s23, %s510_s23, %s511_s24  }
   0xe   :  { %s450_s27 = scalar_lea.vmem %s19_s21, 128  ;;  %p455_p6 = scmp.lt.s32.totalorder %s19_s21, %s19_s21 }
   0xf   :  { %p451_p5 = scmp.ne.s32.totalorder %s19_s21, %s450_s27  ;;  %p456_p7 = scmp.lt.s32.totalorder %s450_s27, %s450_s27 }
  0x11   :  { %p457_p8 = por %p456_p7, %p455_p6 }
  0x13   :  { %p458_p9 = pnand %p457_p8, %p451_p5 }
  0x15   :  { %461 = shalt.err (!%p458_p9)
}
  0x16   :  { %24 = dma.hbm_to_vmem [thread:$0]  %s566_s0, 128, %s19_s21, [#allocation3], %s510_s23, %s510_s23, %s511_s24  }
  0x17   :  { %s512_s30 = smov [#allocation7]  }
  0x18   :  { %s44_s6 = sshll.u32 %s512_s30, 4  ;;  %s45_s6 = int_to_ptr.vmem [resolvable:$true] %s44_s6 }
  0x19   :  { %s470_s7 = scalar_lea.vmem %s45_s6, 1024  ;;  %p475_p11 = scmp.lt.s32.totalorder %s45_s6, %s45_s6 }
  0x1a   :  { %p471_p10 = scmp.ne.s32.totalorder %s45_s6, %s470_s7  ;;  %p476_p12 = scmp.lt.s32.totalorder %s470_s7, %s470_s7 }
  0x1c   :  { %p477_p13 = por %p476_p12, %p475_p11 }
  0x1e   :  { %p478_p0 = pnand %p477_p13, %p471_p10 }
  0x20   :  { %481 = shalt.err (!%p478_p0)
}
  0x21   :  { %50 = dma.hbm_to_vmem [thread:$0]  %s569_s3, 1024, %s45_s6, [#allocation6], %s510_s23, %s510_s23, %s511_s24  }
  0x22   :  { %502 = dma.done.wait [#allocation3], 128  }
  0x23   :  { %503 = vsyncadd [#allocation3], 4294967168 }
  0x24   :  { %504 = dma.done.wait [#allocation6], 2048  }
  0x25   :  { %505 = vsyncadd [#allocation6], 4294965248  ;;  %v513_v0 = vmov 0.0   ;;  %vm514_vm0 = vmmov 0   ;;  %v405_v1 = vld [vmem:[#allocation5 + $0x38] sm:$0xff]   ;;  %v406_v2 = vld [vmem:[#allocation5 + $0x30] sm:$0xff]  }
  0x26   :  { %355 = vmatprep.subr.bf16.mxu0 %v513_v0  ;;  %371 = vmatprep.mubr.msk.bf16.mxu0 %vm514_vm0, %v513_v0  ;;  %v407_v3 = vld [vmem:[#allocation5 + $0x28] sm:$0xff]   ;;  %v414_v4 = vld [vmem:[#allocation7 + $0x38] sm:$0xff]   ;;  %v408_v5 = vld [vmem:[#allocation5 + $0x20] sm:$0xff]   ;;  %s515_s11 = smov [#allocation8]  }
  0x27   :  { %375 = vmatprep.subr.bf16.mxu1 %v513_v0  ;;  %391 = vmatprep.mubr.msk.bf16.mxu1 %vm514_vm0, %v513_v0  ;;  %v415_v6 = vld [vmem:[#allocation7 + $0x30] sm:$0xff]   ;;  %v409_v7 = vld [vmem:[#allocation5 + $0x18] sm:$0xff]   ;;  %v416_v8 = vld [vmem:[#allocation7 + $0x28] sm:$0xff]   ;;  %s305_s12 = sshll.u32 %s515_s11, 4  ;;  %s306_s12 = int_to_ptr.vmem [resolvable:$true] %s305_s12 }
  0x28   :  { %356 = vmatpush3.bf16.msra.mxu0 %v405_v1  ;;  %376 = vmatpush3.bf16.msra.mxu1 %v414_v4  ;;  %v410_v9 = vld [vmem:[#allocation5 + $0x10] sm:$0xff]   ;;  %v417_v10 = vld [vmem:[#allocation7 + $0x20] sm:$0xff]   ;;  %v411_v11 = vld [vmem:[#allocation5 + $0x8] sm:$0xff]   ;;  %p487_p2 = scmp.lt.s32.totalorder %s306_s12, %s306_s12 }
  0x29   :  { %357 = vmatprep.subr.bf16.mxu0 %v513_v0  ;;  %377 = vmatprep.subr.bf16.mxu1 %v513_v0  ;;  %v418_v12 = vld [vmem:[#allocation7 + $0x18] sm:$0xff]   ;;  %v412_v13 = vld [vmem:[#allocation5] sm:$0xff]   ;;  %v419_v15 = vld [vmem:[#allocation7 + $0x10] sm:$0xff]  }
  0x2a   :  { %v413_v14 = vld [vmem:[#allocation2] sm:$0xff]   ;;  %v420_v16 = vld [vmem:[#allocation7 + $0x8] sm:$0xff]   ;;  %v421_v17 = vld [vmem:[#allocation7] sm:$0xff]  }
  0x2b   :  { %v318_v18 = vld [vmem:[%s568_s2] ss:$0 sm:$0xff]  ;;  %s482_s2 = scalar_lea.vmem %s306_s12, 256 }
  0x2c   :  { %358 = vmatpush3.bf16.msra.mxu0 %v406_v2  ;;  %378 = vmatpush3.bf16.msra.mxu1 %v415_v6  ;;  %v328_v28 = vld [vmem:[%s570_s4] ss:$0 sm:$0xff]  ;;  %p483_p1 = scmp.ne.s32.totalorder %s306_s12, %s482_s2  ;;  %p488_p3 = scmp.lt.s32.totalorder %s482_s2, %s482_s2 }
  0x2d   :  { %359 = vmatprep.subr.bf16.mxu0 %v513_v0  ;;  %379 = vmatprep.subr.bf16.mxu1 %v513_v0 }
  0x2e   :  { %p489_p4 = por %p488_p3, %p487_p2 }
  0x30   :  { %360 = vmatpush3.bf16.msra.mxu0 %v407_v3  ;;  %380 = vmatpush3.bf16.msra.mxu1 %v416_v8  ;;  %p490_p5 = pnand %p489_p4, %p483_p1 }
  0x31   :  { %361 = vmatprep.subr.bf16.mxu0 %v513_v0  ;;  %381 = vmatprep.subr.bf16.mxu1 %v513_v0 }
  0x34   :  { %362 = vmatpush3.bf16.msra.mxu0 %v408_v5  ;;  %382 = vmatpush3.bf16.msra.mxu1 %v417_v10 }
  0x35   :  { %363 = vmatprep.subr.bf16.mxu0 %v513_v0  ;;  %383 = vmatprep.subr.bf16.mxu1 %v513_v0 }
  0x38   :  { %364 = vmatpush3.bf16.msra.mxu0 %v409_v7  ;;  %384 = vmatpush3.bf16.msra.mxu1 %v418_v12 }
  0x39   :  { %365 = vmatprep.subr.bf16.mxu0 %v513_v0  ;;  %385 = vmatprep.subr.bf16.mxu1 %v513_v0 }
  0x3c   :  { %366 = vmatpush3.bf16.msra.mxu0 %v410_v9  ;;  %386 = vmatpush3.bf16.msra.mxu1 %v419_v15 }
  0x3d   :  { %367 = vmatprep.subr.bf16.mxu0 %v513_v0  ;;  %387 = vmatprep.subr.bf16.mxu1 %v513_v0 }
  0x40   :  { %368 = vmatpush3.bf16.msra.mxu0 %v411_v11  ;;  %388 = vmatpush3.bf16.msra.mxu1 %v420_v16 }
  0x41   :  { %369 = vmatprep.subr.bf16.mxu0 %v513_v0  ;;  %389 = vmatprep.subr.bf16.mxu1 %v513_v0 }
  0x44   :  { %370 = vmatpush3.bf16.msra.mxu0 %v412_v13  ;;  %390 = vmatpush3.bf16.msra.mxu1 %v421_v17 }
  0x47   :  { %372 = vmatmul.mubr.bf16.vlgmr.msra.gmra.mxu0 %v413_v14 }
 0x107   :  { %v176_v19 = vpop.f32.mrf.mxu0 }
 0x108   :  { %v177_v21 = vadd.f32 %v318_v18, %v176_v19 }
 0x109   :  { %v373_v20 = vpop.f32.mrf.mxu0 }
 0x10a   :  { %v183_v25 = vmax.f32 %v177_v21, 0.0 }
 0x10b   :  { %v179_v22 = vpop.f32.mrf.mxu0 }
 0x10c   :  { %v180_v23 = vadd.f32 %v318_v18, %v179_v22 }
 0x10d   :  { %v374_v24 = vpop.f32.mrf.mxu0 }
 0x10e   :  { %v184_v26 = vmax.f32 %v180_v23, 0.0 }
 0x110   :  { %v185_v27 = vpack.c.bf16 %v184_v26, %v183_v25 }
 0x112   :  { %392 = vmatmul.mubr.bf16.vlgmr.msra.gmra.mxu1 %v185_v27 }
 0x1d2   :  { %v291_v29 = vpop.f32.mrf.mxu1 }
 0x1d3   :  { %v292_v30 = vadd.f32 %v328_v28, %v291_v29 }
 0x1d4   :  { %v393_v31 = vpop.f32.mrf.mxu1 }
 0x1d5   :  { %298 = vst [vmem:[#allocation8] sm:$0xff] %v292_v30 }
 0x1d6   :  { %v294_v32 = vpop.f32.mrf.mxu1 }
 0x1d7   :  { %v295_v33 = vadd.f32 %v328_v28, %v294_v32 }
 0x1d8   :  { %v394_v34 = vpop.f32.mrf.mxu1 }
 0x1d9   :  { %299 = vst [vmem:[#allocation8 + $0x8] sm:$0xff] %v295_v33 }
 0x1da   :  { %493 = shalt.err (!%p490_p5)
}
 0x1db   :  { %s516_s13 = smov 128   ;;  %s517_s4 = smov 8  }
 0x1dc   :  { %311 = dma.vmem_to_hbm [thread:$0]  %s306_s12, 256, %s571_s5, [#allocation4], %s516_s13, %s516_s13, %s517_s4  }
 0x1dd   :  { %506 = dma.done.wait [#allocation4], 256  }
 0x1de   :  { %507 = vsyncadd [#allocation4], 4294967040 }
 0x1df   :  { %315 = vsyncpa [#allocation3], 1 }
 0x1e0   :  { %316 = vsyncpa [#allocation6], 1 }
 0x1e1   :  { %317 = vsyncpa [#allocation4], 1 }

// kernel: tpu_custom_call.1
= control target key start
LH: loop header
LB: loop body
LE: loop exit
PB: predicated region body
PF: predicated region fallthrough
CT: control target
= control target key end

     0   :  { %10 = vsyncpa [#allocation3], 0  ;;  %s566_s0 = inlined_call_operand.hbm [shape: bf16[16,128], index: 0, kind: input, shape index: {}]   ;;  %s567_s1 = inlined_call_operand.hbm [shape: bf16[128,128], index: 1, kind: input, shape index: {}]   ;;  %s568_s2 = inlined_call_operand.vmem [shape: f32[1,128], index: 2, kind: input, shape index: {}]   ;;  %s569_s3 = inlined_call_operand.hbm [shape: bf16[128,128], index: 3, kind: input, shape index: {}]   ;;  %s570_s4 = inlined_call_operand.vmem [shape: f32[1,128], index: 4, kind: input, shape index: {}]   ;;  %s571_s5 = inlined_call_operand.hbm [shape: f32[16,128], index: 5, kind: output, shape index: {}]  }
   0x1   :  { %11 = vsyncpa [#allocation6], 0 }
   0x2   :  { %12 = vsyncpa [#allocation4], 0  ;;  %s508_s18 = smov [#allocation5]   ;;  %s509_s20 = smov [#allocation2]  }
   0x3   :  { %s30_s19 = sshll.u32 %s508_s18, 4  ;;  %s18_s21 = sshll.u32 %s509_s20, 4  ;;  %s31_s19 = int_to_ptr.vmem [resolvable:$true] %s30_s19  ;;  %s19_s21 = int_to_ptr.vmem [resolvable:$true] %s18_s21 }
   0x4   :  { %s430_s22 = scalar_lea.vmem %s31_s19, 1024  ;;  %p435_p1 = scmp.lt.s32.totalorder %s31_s19, %s31_s19 }
   0x5   :  { %p431_p0 = scmp.ne.s32.totalorder %s31_s19, %s430_s22  ;;  %p436_p2 = scmp.lt.s32.totalorder %s430_s22, %s430_s22 }
   0x7   :  { %p437_p3 = por %p436_p2, %p435_p1 }
   0x9   :  { %p438_p4 = pnand %p437_p3, %p431_p0 }
   0xb   :  { %441 = shalt.err (!%p438_p4)
}
   0xc   :  { %s510_s23 = smov 64   ;;  %s511_s24 = smov 4  }
   0xd   :  { %36 = dma.hbm_to_vmem [thread:$0]  %s567_s1, 1024, %s31_s19, [#allocation6], %s510_s23, %s510_s23, %s511_s24  }
   0xe   :  { %s450_s27 = scalar_lea.vmem %s19_s21, 128  ;;  %p455_p6 = scmp.lt.s32.totalorder %s19_s21, %s19_s21 }
   0xf   :  { %p451_p5 = scmp.ne.s32.totalorder %s19_s21, %s450_s27  ;;  %p456_p7 = scmp.lt.s32.totalorder %s450_s27, %s450_s27 }
  0x11   :  { %p457_p8 = por %p456_p7, %p455_p6 }
  0x13   :  { %p458_p9 = pnand %p457_p8, %p451_p5 }
  0x15   :  { %461 = shalt.err (!%p458_p9)
}
  0x16   :  { %24 = dma.hbm_to_vmem [thread:$0]  %s566_s0, 128, %s19_s21, [#allocation3], %s510_s23, %s510_s23, %s511_s24  }
  0x17   :  { %s512_s30 = smov [#allocation7]  }
  0x18   :  { %s44_s6 = sshll.u32 %s512_s30, 4  ;;  %s45_s6 = int_to_ptr.vmem [resolvable:$true] %s44_s6 }
  0x19   :  { %s470_s7 = scalar_lea.vmem %s45_s6, 1024  ;;  %p475_p11 = scmp.lt.s32.totalorder %s45_s6, %s45_s6 }
  0x1a   :  { %p471_p10 = scmp.ne.s32.totalorder %s45_s6, %s470_s7  ;;  %p476_p12 = scmp.lt.s32.totalorder %s470_s7, %s470_s7 }
  0x1c   :  { %p477_p13 = por %p476_p12, %p475_p11 }
  0x1e   :  { %p478_p0 = pnand %p477_p13, %p471_p10 }
  0x20   :  { %481 = shalt.err (!%p478_p0)
}
  0x21   :  { %50 = dma.hbm_to_vmem [thread:$0]  %s569_s3, 1024, %s45_s6, [#allocation6], %s510_s23, %s510_s23, %s511_s24  }
  0x22   :  { %502 = dma.done.wait [#allocation3], 128  }
  0x23   :  { %503 = vsyncadd [#allocation3], 4294967168 }
  0x24   :  { %504 = dma.done.wait [#allocation6], 2048  }
  0x25   :  { %505 = vsyncadd [#allocation6], 4294965248  ;;  %v513_v0 = vmov 0.0   ;;  %vm514_vm0 = vmmov 0   ;;  %v405_v1 = vld [vmem:[#allocation5 + $0x38] sm:$0xff]   ;;  %v406_v2 = vld [vmem:[#allocation5 + $0x30] sm:$0xff]  }
  0x26   :  { %355 = vmatprep.subr.bf16.mxu0 %v513_v0  ;;  %371 = vmatprep.mubr.msk.bf16.mxu0 %vm514_vm0, %v513_v0  ;;  %v407_v3 = vld [vmem:[#allocation5 + $0x28] sm:$0xff]   ;;  %v414_v4 = vld [vmem:[#allocation7 + $0x38] sm:$0xff]   ;;  %v408_v5 = vld [vmem:[#allocation5 + $0x20] sm:$0xff]   ;;  %s515_s11 = smov [#allocation8]  }
  0x27   :  { %375 = vmatprep.subr.bf16.mxu1 %v513_v0  ;;  %391 = vmatprep.mubr.msk.bf16.mxu1 %vm514_vm0, %v513_v0  ;;  %v415_v6 = vld [vmem:[#allocation7 + $0x30] sm:$0xff]   ;;  %v409_v7 = vld [vmem:[#allocation5 + $0x18] sm:$0xff]   ;;  %v416_v8 = vld [vmem:[#allocation7 + $0x28] sm:$0xff]   ;;  %s305_s12 = sshll.u32 %s515_s11, 4  ;;  %s306_s12 = int_to_ptr.vmem [resolvable:$true] %s305_s12 }
  0x28   :  { %356 = vmatpush3.bf16.msra.mxu0 %v405_v1  ;;  %376 = vmatpush3.bf16.msra.mxu1 %v414_v4  ;;  %v410_v9 = vld [vmem:[#allocation5 + $0x10] sm:$0xff]   ;;  %v417_v10 = vld [vmem:[#allocation7 + $0x20] sm:$0xff]   ;;  %v411_v11 = vld [vmem:[#allocation5 + $0x8] sm:$0xff]   ;;  %p487_p2 = scmp.lt.s32.totalorder %s306_s12, %s306_s12 }
  0x29   :  { %357 = vmatprep.subr.bf16.mxu0 %v513_v0  ;;  %377 = vmatprep.subr.bf16.mxu1 %v513_v0  ;;  %v418_v12 = vld [vmem:[#allocation7 + $0x18] sm:$0xff]   ;;  %v412_v13 = vld [vmem:[#allocation5] sm:$0xff]   ;;  %v419_v15 = vld [vmem:[#allocation7 + $0x10] sm:$0xff]  }
  0x2a   :  { %v413_v14 = vld [vmem:[#allocation2] sm:$0xff]   ;;  %v420_v16 = vld [vmem:[#allocation7 + $0x8] sm:$0xff]   ;;  %v421_v17 = vld [vmem:[#allocation7] sm:$0xff]  }
  0x2b   :  { %v318_v18 = vld [vmem:[%s568_s2] ss:$0 sm:$0xff]  ;;  %s482_s2 = scalar_lea.vmem %s306_s12, 256 }
  0x2c   :  { %358 = vmatpush3.bf16.msra.mxu0 %v406_v2  ;;  %378 = vmatpush3.bf16.msra.mxu1 %v415_v6  ;;  %v328_v28 = vld [vmem:[%s570_s4] ss:$0 sm:$0xff]  ;;  %p483_p1 = scmp.ne.s32.totalorder %s306_s12, %s482_s2  ;;  %p488_p3 = scmp.lt.s32.totalorder %s482_s2, %s482_s2 }
  0x2d   :  { %359 = vmatprep.subr.bf16.mxu0 %v513_v0  ;;  %379 = vmatprep.subr.bf16.mxu1 %v513_v0 }
  0x2e   :  { %p489_p4 = por %p488_p3, %p487_p2 }
  0x30   :  { %360 = vmatpush3.bf16.msra.mxu0 %v407_v3  ;;  %380 = vmatpush3.bf16.msra.mxu1 %v416_v8  ;;  %p490_p5 = pnand %p489_p4, %p483_p1 }
  0x31   :  { %361 = vmatprep.subr.bf16.mxu0 %v513_v0  ;;  %381 = vmatprep.subr.bf16.mxu1 %v513_v0 }
  0x34   :  { %362 = vmatpush3.bf16.msra.mxu0 %v408_v5  ;;  %382 = vmatpush3.bf16.msra.mxu1 %v417_v10 }
  0x35   :  { %363 = vmatprep.subr.bf16.mxu0 %v513_v0  ;;  %383 = vmatprep.subr.bf16.mxu1 %v513_v0 }
  0x38   :  { %364 = vmatpush3.bf16.msra.mxu0 %v409_v7  ;;  %384 = vmatpush3.bf16.msra.mxu1 %v418_v12 }
  0x39   :  { %365 = vmatprep.subr.bf16.mxu0 %v513_v0  ;;  %385 = vmatprep.subr.bf16.mxu1 %v513_v0 }
  0x3c   :  { %366 = vmatpush3.bf16.msra.mxu0 %v410_v9  ;;  %386 = vmatpush3.bf16.msra.mxu1 %v419_v15 }
  0x3d   :  { %367 = vmatprep.subr.bf16.mxu0 %v513_v0  ;;  %387 = vmatprep.subr.bf16.mxu1 %v513_v0 }
  0x40   :  { %368 = vmatpush3.bf16.msra.mxu0 %v411_v11  ;;  %388 = vmatpush3.bf16.msra.mxu1 %v420_v16 }
  0x41   :  { %369 = vmatprep.subr.bf16.mxu0 %v513_v0  ;;  %389 = vmatprep.subr.bf16.mxu1 %v513_v0 }
  0x44   :  { %370 = vmatpush3.bf16.msra.mxu0 %v412_v13  ;;  %390 = vmatpush3.bf16.msra.mxu1 %v421_v17 }
  0x47   :  { %372 = vmatmul.mubr.bf16.vlgmr.msra.gmra.mxu0 %v413_v14 }
 0x107   :  { %v176_v19 = vpop.f32.mrf.mxu0 }
 0x108   :  { %v177_v21 = vadd.f32 %v318_v18, %v176_v19 }
 0x109   :  { %v373_v20 = vpop.f32.mrf.mxu0 }
 0x10a   :  { %v183_v25 = vmax.f32 %v177_v21, 0.0 }
 0x10b   :  { %v179_v22 = vpop.f32.mrf.mxu0 }
 0x10c   :  { %v180_v23 = vadd.f32 %v318_v18, %v179_v22 }
 0x10d   :  { %v374_v24 = vpop.f32.mrf.mxu0 }
 0x10e   :  { %v184_v26 = vmax.f32 %v180_v23, 0.0 }
 0x110   :  { %v185_v27 = vpack.c.bf16 %v184_v26, %v183_v25 }
 0x112   :  { %392 = vmatmul.mubr.bf16.vlgmr.msra.gmra.mxu1 %v185_v27 }
 0x1d2   :  { %v291_v29 = vpop.f32.mrf.mxu1 }
 0x1d3   :  { %v292_v30 = vadd.f32 %v328_v28, %v291_v29 }
 0x1d4   :  { %v393_v31 = vpop.f32.mrf.mxu1 }
 0x1d5   :  { %298 = vst [vmem:[#allocation8] sm:$0xff] %v292_v30 }
 0x1d6   :  { %v294_v32 = vpop.f32.mrf.mxu1 }
 0x1d7   :  { %v295_v33 = vadd.f32 %v328_v28, %v294_v32 }
 0x1d8   :  { %v394_v34 = vpop.f32.mrf.mxu1 }
 0x1d9   :  { %299 = vst [vmem:[#allocation8 + $0x8] sm:$0xff] %v295_v33 }
 0x1da   :  { %493 = shalt.err (!%p490_p5)
}
 0x1db   :  { %s516_s13 = smov 128   ;;  %s517_s4 = smov 8  }
 0x1dc   :  { %311 = dma.vmem_to_hbm [thread:$0]  %s306_s12, 256, %s571_s5, [#allocation4], %s516_s13, %s516_s13, %s517_s4  }
 0x1dd   :  { %506 = dma.done.wait [#allocation4], 256  }
 0x1de   :  { %507 = vsyncadd [#allocation4], 4294967040 }
 0x1df   :  { %315 = vsyncpa [#allocation3], 1 }
 0x1e0   :  { %316 = vsyncpa [#allocation6], 1 }
 0x1e1   :  { %317 = vsyncpa [#allocation4], 1 }

</bundles_post_ra>
